<compile_context>
chip_gen: v6e
topology: v6e:2x2x1
jax: 0.10.0
libtpu: 0.0.40
codegen_flags: <defaults>
</compile_context>

<pallas_src>
import numpy as np
import jax
import jax.numpy as jnp
from jax import lax
from jax.experimental import pallas as pl
from jax.experimental.pallas import tpu as pltpu

N_POINTS = 33                     # breakpoints -> 32 intervals
X_MIN, X_MAX = -1.0, 1.0
LANES = 128                       # lane width
BLOCK_ROWS = 2048                 # max rows per grid block (1 MiB f32 per buffer)
SUB_ROWS = 16                     # rows per inner compute chunk (2 f32 vregs/value)


def make_adc_characteristic():
    """Deterministic synthetic single-slope ADC transfer curve (xp -> codes)."""
    xp = np.linspace(X_MIN, X_MAX, N_POINTS, dtype=np.float64)
    ideal = (xp + 1.0) * 0.5 * 255.0                      # ideal 8-bit ramp
    inl = 2.0 * np.sin(3.0 * np.pi * xp)                  # smooth INL error
    fp = ideal + inl
    return jnp.asarray(xp, jnp.float32), jnp.asarray(fp, jnp.float32)


def _round_up(a, b):
    return ((a + b - 1) // b) * b


def _build_tables(xp, fp):
    """Host-side slope/intercept tables for y = m[idx]*x + b[idx] (uniform xp)."""
    xp64 = np.asarray(xp, dtype=np.float64)
    fp64 = np.asarray(fp, dtype=np.float64)
    n_pts = int(xp64.shape[0])
    x_min, x_max = float(xp64[0]), float(xp64[-1])
    dx = (x_max - x_min) / (n_pts - 1)
    # The kernel requires a uniform breakpoint grid (direct index, no search).
    if not np.allclose(xp64, x_min + dx * np.arange(n_pts),
                       rtol=0.0, atol=1e-6 * max(1.0, abs(x_max - x_min))):
        raise ValueError("SS_adc Pallas kernel requires a uniform xp grid")
    m = (fp64[1:] - fp64[:-1]) / (xp64[1:] - xp64[:-1])
    b = fp64[:-1] - m * xp64[:-1]
    n_seg = n_pts - 1
    # Pad the tables to a power of two for the binary select tree; padded
    # entries are never selected because idx is clamped to n_seg - 1.
    n_pad = 1 << max(0, int(np.ceil(np.log2(n_seg))))
    m = np.concatenate([m, np.full(n_pad - n_seg, m[-1])])
    b = np.concatenate([b, np.full(n_pad - n_seg, b[-1])])
    return dict(x_min=x_min, x_max=x_max, inv_dx=1.0 / dx, n_seg=n_seg,
                m_leaves=[float(v) for v in m], b_leaves=[float(v) for v in b])


def _make_interp_kernel(tm, sub, tab):
    """Kernel over a (tm, LANES) block computing y = m[idx]*clip(x) + b[idx]."""
    assert tm % sub == 0
    n_sub = tm // sub
    depth = int(round(np.log2(len(tab["m_leaves"])))) if len(tab["m_leaves"]) > 1 else 0
    x_min, x_max = tab["x_min"], tab["x_max"]
    inv_dx, n_seg = tab["inv_dx"], tab["n_seg"]
    m_leaves, b_leaves = tab["m_leaves"], tab["b_leaves"]

    def lut2(bits_msb, m_lv, b_lv):
        # Binary select tree over the (m, b) tables.  Leaves are trace-time
        # Python constants; the per-level masks are shared by both tables.
        if len(m_lv) == 1:
            return m_lv[0], b_lv[0]
        half = len(m_lv) // 2
        m_lo, b_lo = lut2(bits_msb[1:], m_lv[:half], b_lv[:half])
        m_hi, b_hi = lut2(bits_msb[1:], m_lv[half:], b_lv[half:])
        bit = bits_msb[0]
        return jnp.where(bit, m_hi, m_lo), jnp.where(bit, b_hi, b_lo)

    def compute(x):
        xf = x.astype(jnp.float32)
        # Clamp to the table range: np.interp end clamping.
        xc = jnp.clip(xf, x_min, x_max)
        # Uniform grid -> direct segment index.  t >= 0, so float->int
        # truncation equals floor; min() in float clamps the right edge.
        t = (xc - x_min) * inv_dx
        idx = jnp.minimum(t, float(n_seg - 1)).astype(jnp.int32)
        if depth == 0:
            m_sel, b_sel = m_leaves[0], b_leaves[0]
        else:
            bits = [(idx & (1 << k)) > 0 for k in range(depth)]   # LSB..MSB
            m_sel, b_sel = lut2(bits[::-1], m_leaves, b_leaves)
        return m_sel * xc + b_sel

    if n_sub == 1:
        def kernel(x_ref, o_ref):
            o_ref[...] = compute(x_ref[...]).astype(o_ref.dtype)
    else:
        def kernel(x_ref, o_ref):
            def do_chunk(r):
                x = x_ref[pl.ds(r, sub), :]
                o_ref[pl.ds(r, sub), :] = compute(x).astype(o_ref.dtype)

            n_pair = n_sub // 2

            def body(j, carry):
                # Manual unroll-by-2: two independent sub-chunks per iteration
                # so loads/stores of one overlap the VALU stream of the other.
                r0 = pl.multiple_of(j * (2 * sub), sub)
                do_chunk(r0)
                do_chunk(r0 + sub)
                return carry

            if n_pair > 0:
                lax.fori_loop(0, n_pair, body, 0)
            if n_sub % 2:
                do_chunk((n_sub - 1) * sub)

    return kernel


def _choose_tiles(rows):
    """Pick (tm, sub) for a (rows, LANES) array."""
    if rows <= 8:
        return rows, rows                      # single tiny full block
    # Even number of blocks, each <= BLOCK_ROWS, so the "parallel" grid splits
    # evenly over v7x's two TensorCores; v5e/v6e (single TC) are unaffected.
    num_blocks = 2 * (-(-rows // (2 * BLOCK_ROWS)))
    tm = _round_up(-(-rows // num_blocks), 8)
    sub = SUB_ROWS if tm % SUB_ROWS == 0 else 8
    return tm, sub


def _run_2d(x2, out_dtype, tab):
    rows = x2.shape[0]
    tm, sub = _choose_tiles(rows)
    grid = (pl.cdiv(rows, tm),)                # partial last block handled by Pallas
    return pl.pallas_call(
        _make_interp_kernel(tm, sub, tab),
        out_shape=jax.ShapeDtypeStruct((rows, LANES), out_dtype),
        grid=grid,
        in_specs=[pl.BlockSpec((tm, LANES), lambda i: (i, 0))],
        out_specs=pl.BlockSpec((tm, LANES), lambda i: (i, 0)),
        compiler_params=pltpu.CompilerParams(
            dimension_semantics=("parallel",)),
    )(x2)


def ss_adc_forward(x, xp, fp):
    """SS_adc.forward(x) == InterpolF(x): elementwise LUT interpolation."""
    if not jnp.issubdtype(x.dtype, jnp.floating):
        raise TypeError("ss_adc_forward expects a floating-point input")
    orig_shape = x.shape
    n = x.size
    if n == 0:
        return x

    # xp/fp are characterization data (module "weights"): concrete arrays only.
    tab = _build_tables(xp, fp)

    flat = x.reshape(-1)
    n_main = (n // LANES) * LANES
    rem = n - n_main

    pieces = []
    if n_main:
        # Lane-aligned bulk: no padding, no slicing (full-range slice is free).
        y = _run_2d(flat[:n_main].reshape(n_main // LANES, LANES), x.dtype, tab)
        pieces.append(y.reshape(-1))
    if rem:
        # TODO(synk): fully pad-free ragged tail needs manual DMA + masked
        # stores; here only the <128-element fragment is padded (cheap).
        tail = jnp.pad(flat[n_main:], (0, LANES - rem))
        y_tail = _run_2d(tail.reshape(1, LANES), x.dtype, tab)
        pieces.append(y_tail.reshape(-1)[:rem])

    out_flat = pieces[0] if len(pieces) == 1 else jnp.concatenate(pieces)
    return out_flat.reshape(orig_shape)


if __name__ == "__main__":
    key = jax.random.PRNGKey(0)
    # NCHW input; values extend past the LUT range to exercise end clamping.
    x = 1.2 * jax.random.normal(key, (2, 4, 16, 16), dtype=jnp.float32)

    xp, fp = make_adc_characteristic()

    out = jax.block_until_ready(ss_adc_forward(x, xp, fp))

    # Pure-JAX reference (np.interp semantics: clamp outside table range).
    ref = jnp.interp(x.reshape(-1), xp, fp).reshape(x.shape)
    assert out.shape == x.shape and out.dtype == x.dtype
    assert jnp.allclose(out, ref, atol=1e-3, rtol=1e-5), "mismatch vs reference"

    print("KERNEL_OK")
</pallas_src>

<mosaic_0001>
module attributes {stable_mosaic.version = 11 : i64} {
  func.func @kernel(%arg0: i32, %arg1: memref<8x128xf32, #tpu.memory_space<vmem>>, %arg2: memref<8x128xf32, #tpu.memory_space<vmem>>) attributes {dimension_semantics = [#tpu.dimension_semantics<parallel>], iteration_bounds = array<i64: 2>, scalar_prefetch = 0 : i64, scratch_operands = 0 : i64, tpu.core_type = #tpu.core_type<tc>, window_params = [{transform_indices = @transform_0, window_bounds = array<i64: 8, 128>}, {transform_indices = @transform_1, window_bounds = array<i64: 8, 128>}]} {
    %c0 = arith.constant 0 : index
    %c0_0 = arith.constant 0 : index
    %0 = vector.load %arg1[%c0, %c0_0] : memref<8x128xf32, #tpu.memory_space<vmem>>, vector<8x128xf32>
    %cst = arith.constant -1.000000e+00 : f32
    %cst_1 = arith.constant 1.000000e+00 : f32
    %1 = vector.broadcast %cst : f32 to vector<8x128xf32>
    %2 = arith.maximumf %1, %0 : vector<8x128xf32>
    %3 = vector.broadcast %cst_1 : f32 to vector<8x128xf32>
    %4 = arith.minimumf %3, %2 : vector<8x128xf32>
    %cst_2 = arith.constant -1.000000e+00 : f32
    %5 = vector.broadcast %cst_2 : f32 to vector<8x128xf32>
    %6 = arith.subf %4, %5 : vector<8x128xf32>
    %cst_3 = arith.constant 1.600000e+01 : f32
    %7 = vector.broadcast %cst_3 : f32 to vector<8x128xf32>
    %8 = arith.mulf %6, %7 : vector<8x128xf32>
    %cst_4 = arith.constant 3.100000e+01 : f32
    %9 = vector.broadcast %cst_4 : f32 to vector<8x128xf32>
    %10 = arith.minimumf %8, %9 : vector<8x128xf32>
    %11 = arith.fptosi %10 : vector<8x128xf32> to vector<8x128xi32>
    %c1_i32 = arith.constant 1 : i32
    %12 = vector.broadcast %c1_i32 : i32 to vector<8x128xi32>
    %13 = arith.andi %11, %12 : vector<8x128xi32>
    %c0_i32 = arith.constant 0 : i32
    %14 = vector.broadcast %c0_i32 : i32 to vector<8x128xi32>
    %15 = arith.cmpi sgt, %13, %14 : vector<8x128xi32>
    %c2_i32 = arith.constant 2 : i32
    %16 = vector.broadcast %c2_i32 : i32 to vector<8x128xi32>
    %17 = arith.andi %11, %16 : vector<8x128xi32>
    %c0_i32_5 = arith.constant 0 : i32
    %18 = vector.broadcast %c0_i32_5 : i32 to vector<8x128xi32>
    %19 = arith.cmpi sgt, %17, %18 : vector<8x128xi32>
    %c4_i32 = arith.constant 4 : i32
    %20 = vector.broadcast %c4_i32 : i32 to vector<8x128xi32>
    %21 = arith.andi %11, %20 : vector<8x128xi32>
    %c0_i32_6 = arith.constant 0 : i32
    %22 = vector.broadcast %c0_i32_6 : i32 to vector<8x128xi32>
    %23 = arith.cmpi sgt, %21, %22 : vector<8x128xi32>
    %c8_i32 = arith.constant 8 : i32
    %24 = vector.broadcast %c8_i32 : i32 to vector<8x128xi32>
    %25 = arith.andi %11, %24 : vector<8x128xi32>
    %c0_i32_7 = arith.constant 0 : i32
    %26 = vector.broadcast %c0_i32_7 : i32 to vector<8x128xi32>
    %27 = arith.cmpi sgt, %25, %26 : vector<8x128xi32>
    %c16_i32 = arith.constant 16 : i32
    %28 = vector.broadcast %c16_i32 : i32 to vector<8x128xi32>
    %29 = arith.andi %11, %28 : vector<8x128xi32>
    %c0_i32_8 = arith.constant 0 : i32
    %30 = vector.broadcast %c0_i32_8 : i32 to vector<8x128xi32>
    %31 = arith.cmpi sgt, %29, %30 : vector<8x128xi32>
    %cst_9 = arith.constant 115.714096 : f32
    %cst_10 = arith.constant 109.721756 : f32
    %32 = vector.broadcast %cst_9 : f32 to vector<8x128xf32>
    %33 = vector.broadcast %cst_10 : f32 to vector<8x128xf32>
    %34 = arith.select %15, %32, %33 : vector<8x128xi1>, vector<8x128xf32>
    %cst_11 = arith.constant 115.339577 : f32
    %cst_12 = arith.constant 109.721756 : f32
    %35 = vector.broadcast %cst_11 : f32 to vector<8x128xf32>
    %36 = vector.broadcast %cst_12 : f32 to vector<8x128xf32>
    %37 = arith.select %15, %35, %36 : vector<8x128xi1>, vector<8x128xf32>
    %cst_13 = arith.constant 136.257721 : f32
    %cst_14 = arith.constant 125.679016 : f32
    %38 = vector.broadcast %cst_13 : f32 to vector<8x128xf32>
    %39 = vector.broadcast %cst_14 : f32 to vector<8x128xf32>
    %40 = arith.select %15, %38, %39 : vector<8x128xi1>, vector<8x128xf32>
    %cst_15 = arith.constant 132.654083 : f32
    %cst_16 = arith.constant 124.058884 : f32
    %41 = vector.broadcast %cst_15 : f32 to vector<8x128xf32>
    %42 = vector.broadcast %cst_16 : f32 to vector<8x128xf32>
    %43 = arith.select %15, %41, %42 : vector<8x128xi1>, vector<8x128xf32>
    %44 = arith.select %19, %40, %34 : vector<8x128xi1>, vector<8x128xf32>
    %45 = arith.select %19, %43, %37 : vector<8x128xi1>, vector<8x128xf32>
    %cst_17 = arith.constant 145.98877 : f32
    %cst_18 = arith.constant 143.884491 : f32
    %46 = vector.broadcast %cst_17 : f32 to vector<8x128xf32>
    %47 = vector.broadcast %cst_18 : f32 to vector<8x128xf32>
    %48 = arith.select %15, %46, %47 : vector<8x128xi1>, vector<8x128xf32>
    %cst_19 = arith.constant 139.820847 : f32
    %cst_20 = arith.constant 138.374161 : f32
    %49 = vector.broadcast %cst_19 : f32 to vector<8x128xf32>
    %50 = vector.broadcast %cst_20 : f32 to vector<8x128xf32>
    %51 = arith.select %15, %49, %50 : vector<8x128xi1>, vector<8x128xf32>
    %cst_21 = arith.constant 132.892944 : f32
    %cst_22 = arith.constant 141.861206 : f32
    %52 = vector.broadcast %cst_21 : f32 to vector<8x128xf32>
    %53 = vector.broadcast %cst_22 : f32 to vector<8x128xf32>
    %54 = arith.select %15, %52, %53 : vector<8x128xi1>, vector<8x128xf32>
    %cst_23 = arith.constant 132.196472 : f32
    %cst_24 = arith.constant 137.241119 : f32
    %55 = vector.broadcast %cst_23 : f32 to vector<8x128xf32>
    %56 = vector.broadcast %cst_24 : f32 to vector<8x128xf32>
    %57 = arith.select %15, %55, %56 : vector<8x128xi1>, vector<8x128xf32>
    %58 = arith.select %19, %54, %48 : vector<8x128xi1>, vector<8x128xf32>
    %59 = arith.select %19, %57, %51 : vector<8x128xi1>, vector<8x128xf32>
    %60 = arith.select %23, %58, %44 : vector<8x128xi1>, vector<8x128xf32>
    %61 = arith.select %23, %59, %45 : vector<8x128xi1>, vector<8x128xf32>
    %cst_25 = arith.constant 113.138794 : f32
    %cst_26 = arith.constant 122.107056 : f32
    %62 = vector.broadcast %cst_25 : f32 to vector<8x128xf32>
    %63 = vector.broadcast %cst_26 : f32 to vector<8x128xf32>
    %64 = arith.select %15, %62, %63 : vector<8x128xi1>, vector<8x128xf32>
    %cst_27 = arith.constant 122.879913 : f32
    %cst_28 = arith.constant 126.803528 : f32
    %65 = vector.broadcast %cst_27 : f32 to vector<8x128xf32>
    %66 = vector.broadcast %cst_28 : f32 to vector<8x128xf32>
    %67 = arith.select %15, %65, %66 : vector<8x128xi1>, vector<8x128xf32>
    %cst_29 = arith.constant 111.115479 : f32
    %cst_30 = arith.constant 109.01123 : f32
    %68 = vector.broadcast %cst_29 : f32 to vector<8x128xf32>
    %69 = vector.broadcast %cst_30 : f32 to vector<8x128xf32>
    %70 = arith.select %15, %68, %69 : vector<8x128xi1>, vector<8x128xf32>
    %cst_31 = arith.constant 121.989655 : f32
    %cst_32 = arith.constant 121.332077 : f32
    %71 = vector.broadcast %cst_31 : f32 to vector<8x128xf32>
    %72 = vector.broadcast %cst_32 : f32 to vector<8x128xf32>
    %73 = arith.select %15, %71, %72 : vector<8x128xi1>, vector<8x128xf32>
    %74 = arith.select %19, %70, %64 : vector<8x128xi1>, vector<8x128xf32>
    %75 = arith.select %19, %73, %67 : vector<8x128xi1>, vector<8x128xf32>
    %cst_33 = arith.constant 129.321045 : f32
    %cst_34 = arith.constant 118.74231 : f32
    %76 = vector.broadcast %cst_33 : f32 to vector<8x128xf32>
    %77 = vector.broadcast %cst_34 : f32 to vector<8x128xf32>
    %78 = arith.select %15, %76, %77 : vector<8x128xi1>, vector<8x128xf32>
    %cst_35 = arith.constant 125.879875 : f32
    %cst_36 = arith.constant 123.896362 : f32
    %79 = vector.broadcast %cst_35 : f32 to vector<8x128xf32>
    %80 = vector.broadcast %cst_36 : f32 to vector<8x128xf32>
    %81 = arith.select %15, %79, %80 : vector<8x128xi1>, vector<8x128xf32>
    %cst_37 = arith.constant 145.278198 : f32
    %cst_38 = arith.constant 139.285889 : f32
    %82 = vector.broadcast %cst_37 : f32 to vector<8x128xf32>
    %83 = vector.broadcast %cst_38 : f32 to vector<8x128xf32>
    %84 = arith.select %15, %82, %83 : vector<8x128xi1>, vector<8x128xf32>
    %cst_39 = arith.constant 1.275000e+02 : f32
    %cst_40 = arith.constant 127.125481 : f32
    %85 = vector.broadcast %cst_39 : f32 to vector<8x128xf32>
    %86 = vector.broadcast %cst_40 : f32 to vector<8x128xf32>
    %87 = arith.select %15, %85, %86 : vector<8x128xi1>, vector<8x128xf32>
    %88 = arith.select %19, %84, %78 : vector<8x128xi1>, vector<8x128xf32>
    %89 = arith.select %19, %87, %81 : vector<8x128xi1>, vector<8x128xf32>
    %90 = arith.select %23, %88, %74 : vector<8x128xi1>, vector<8x128xf32>
    %91 = arith.select %23, %89, %75 : vector<8x128xi1>, vector<8x128xf32>
    %92 = arith.select %27, %90, %60 : vector<8x128xi1>, vector<8x128xf32>
    %93 = arith.select %27, %91, %61 : vector<8x128xi1>, vector<8x128xf32>
    %cst_41 = arith.constant 139.285889 : f32
    %cst_42 = arith.constant 145.27832 : f32
    %94 = vector.broadcast %cst_41 : f32 to vector<8x128xf32>
    %95 = vector.broadcast %cst_42 : f32 to vector<8x128xf32>
    %96 = arith.select %15, %94, %95 : vector<8x128xi1>, vector<8x128xf32>
    %cst_43 = arith.constant 127.874527 : f32
    %cst_44 = arith.constant 1.275000e+02 : f32
    %97 = vector.broadcast %cst_43 : f32 to vector<8x128xf32>
    %98 = vector.broadcast %cst_44 : f32 to vector<8x128xf32>
    %99 = arith.select %15, %97, %98 : vector<8x128xi1>, vector<8x128xf32>
    %cst_45 = arith.constant 118.742432 : f32
    %cst_46 = arith.constant 129.320801 : f32
    %100 = vector.broadcast %cst_45 : f32 to vector<8x128xf32>
    %101 = vector.broadcast %cst_46 : f32 to vector<8x128xf32>
    %102 = arith.select %15, %100, %101 : vector<8x128xi1>, vector<8x128xf32>
    %cst_47 = arith.constant 131.103607 : f32
    %cst_48 = arith.constant 129.120163 : f32
    %103 = vector.broadcast %cst_47 : f32 to vector<8x128xf32>
    %104 = vector.broadcast %cst_48 : f32 to vector<8x128xf32>
    %105 = arith.select %15, %103, %104 : vector<8x128xi1>, vector<8x128xf32>
    %106 = arith.select %19, %102, %96 : vector<8x128xi1>, vector<8x128xf32>
    %107 = arith.select %19, %105, %99 : vector<8x128xi1>, vector<8x128xf32>
    %cst_49 = arith.constant 109.01123 : f32
    %cst_50 = arith.constant 111.115479 : f32
    %108 = vector.broadcast %cst_49 : f32 to vector<8x128xf32>
    %109 = vector.broadcast %cst_50 : f32 to vector<8x128xf32>
    %110 = arith.select %15, %108, %109 : vector<8x128xi1>, vector<8x128xf32>
    %cst_51 = arith.constant 133.667923 : f32
    %cst_52 = arith.constant 133.010345 : f32
    %111 = vector.broadcast %cst_51 : f32 to vector<8x128xf32>
    %112 = vector.broadcast %cst_52 : f32 to vector<8x128xf32>
    %113 = arith.select %15, %111, %112 : vector<8x128xi1>, vector<8x128xf32>
    %cst_53 = arith.constant 122.106934 : f32
    %cst_54 = arith.constant 113.138916 : f32
    %114 = vector.broadcast %cst_53 : f32 to vector<8x128xf32>
    %115 = vector.broadcast %cst_54 : f32 to vector<8x128xf32>
    %116 = arith.select %15, %114, %115 : vector<8x128xi1>, vector<8x128xf32>
    %cst_55 = arith.constant 128.196533 : f32
    %cst_56 = arith.constant 132.120041 : f32
    %117 = vector.broadcast %cst_55 : f32 to vector<8x128xf32>
    %118 = vector.broadcast %cst_56 : f32 to vector<8x128xf32>
    %119 = arith.select %15, %117, %118 : vector<8x128xi1>, vector<8x128xf32>
    %120 = arith.select %19, %116, %110 : vector<8x128xi1>, vector<8x128xf32>
    %121 = arith.select %19, %119, %113 : vector<8x128xi1>, vector<8x128xf32>
    %122 = arith.select %23, %120, %106 : vector<8x128xi1>, vector<8x128xf32>
    %123 = arith.select %23, %121, %107 : vector<8x128xi1>, vector<8x128xf32>
    %cst_57 = arith.constant 141.861084 : f32
    %cst_58 = arith.constant 132.893066 : f32
    %124 = vector.broadcast %cst_57 : f32 to vector<8x128xf32>
    %125 = vector.broadcast %cst_58 : f32 to vector<8x128xf32>
    %126 = arith.select %15, %124, %125 : vector<8x128xi1>, vector<8x128xf32>
    %cst_59 = arith.constant 117.758957 : f32
    %cst_60 = arith.constant 122.803467 : f32
    %127 = vector.broadcast %cst_59 : f32 to vector<8x128xf32>
    %128 = vector.broadcast %cst_60 : f32 to vector<8x128xf32>
    %129 = arith.select %15, %127, %128 : vector<8x128xi1>, vector<8x128xf32>
    %cst_61 = arith.constant 143.884521 : f32
    %cst_62 = arith.constant 145.98877 : f32
    %130 = vector.broadcast %cst_61 : f32 to vector<8x128xf32>
    %131 = vector.broadcast %cst_62 : f32 to vector<8x128xf32>
    %132 = arith.select %15, %130, %131 : vector<8x128xi1>, vector<8x128xf32>
    %cst_63 = arith.constant 116.625824 : f32
    %cst_64 = arith.constant 115.179153 : f32
    %133 = vector.broadcast %cst_63 : f32 to vector<8x128xf32>
    %134 = vector.broadcast %cst_64 : f32 to vector<8x128xf32>
    %135 = arith.select %15, %133, %134 : vector<8x128xi1>, vector<8x128xf32>
    %136 = arith.select %19, %132, %126 : vector<8x128xi1>, vector<8x128xf32>
    %137 = arith.select %19, %135, %129 : vector<8x128xi1>, vector<8x128xf32>
    %cst_65 = arith.constant 125.679199 : f32
    %cst_66 = arith.constant 136.257568 : f32
    %138 = vector.broadcast %cst_65 : f32 to vector<8x128xf32>
    %139 = vector.broadcast %cst_66 : f32 to vector<8x128xf32>
    %140 = arith.select %15, %138, %139 : vector<8x128xi1>, vector<8x128xf32>
    %cst_67 = arith.constant 130.940964 : f32
    %cst_68 = arith.constant 122.346039 : f32
    %141 = vector.broadcast %cst_67 : f32 to vector<8x128xf32>
    %142 = vector.broadcast %cst_68 : f32 to vector<8x128xf32>
    %143 = arith.select %15, %141, %142 : vector<8x128xi1>, vector<8x128xf32>
    %cst_69 = arith.constant 109.72168 : f32
    %cst_70 = arith.constant 115.714111 : f32
    %144 = vector.broadcast %cst_69 : f32 to vector<8x128xf32>
    %145 = vector.broadcast %cst_70 : f32 to vector<8x128xf32>
    %146 = arith.select %15, %144, %145 : vector<8x128xi1>, vector<8x128xf32>
    %cst_71 = arith.constant 145.27832 : f32
    %cst_72 = arith.constant 139.660416 : f32
    %147 = vector.broadcast %cst_71 : f32 to vector<8x128xf32>
    %148 = vector.broadcast %cst_72 : f32 to vector<8x128xf32>
    %149 = arith.select %15, %147, %148 : vector<8x128xi1>, vector<8x128xf32>
    %150 = arith.select %19, %146, %140 : vector<8x128xi1>, vector<8x128xf32>
    %151 = arith.select %19, %149, %143 : vector<8x128xi1>, vector<8x128xf32>
    %152 = arith.select %23, %150, %136 : vector<8x128xi1>, vector<8x128xf32>
    %153 = arith.select %23, %151, %137 : vector<8x128xi1>, vector<8x128xf32>
    %154 = arith.select %27, %152, %122 : vector<8x128xi1>, vector<8x128xf32>
    %155 = arith.select %27, %153, %123 : vector<8x128xi1>, vector<8x128xf32>
    %156 = arith.select %31, %154, %92 : vector<8x128xi1>, vector<8x128xf32>
    %157 = arith.select %31, %155, %93 : vector<8x128xi1>, vector<8x128xf32>
    %158 = arith.mulf %156, %4 : vector<8x128xf32>
    %159 = arith.addf %158, %157 : vector<8x128xf32>
    %c0_73 = arith.constant 0 : index
    %c0_74 = arith.constant 0 : index
    %160 = vector.load %arg2[%c0_73, %c0_74] : memref<8x128xf32, #tpu.memory_space<vmem>>, vector<8x128xf32>
    tpu.vector_store %arg2[%c0_73, %c0_74], %159 {strides = array<i32>} : memref<8x128xf32, #tpu.memory_space<vmem>>, vector<8x128xf32>,
    return
  }
  func.func @transform_0(%arg0: i32) -> (i32, i32) {
    %c0_i32 = arith.constant 0 : i32
    %c0_i32_0 = arith.constant 0 : i32
    return %arg0, %c0_i32 : i32, i32
  }
  func.func @transform_1(%arg0: i32) -> (i32, i32) {
    %c0_i32 = arith.constant 0 : i32
    %c0_i32_0 = arith.constant 0 : i32
    return %arg0, %c0_i32 : i32, i32
  }
}

</mosaic_0001>

<bundles_post_ra>
// kernel: tpu_custom_call.1
= control target key start
LH: loop header
LB: loop body
LE: loop exit
PB: predicated region body
PF: predicated region fallthrough
CT: control target
= control target key end

     0   :  { %6 = vsyncpa [#allocation3], 0  ;;  %s830_s0 = inlined_call_operand.hbm [shape: f32[16,128], index: 0, kind: input, shape index: {}]   ;;  %s831_s1 = inlined_call_operand.hbm [shape: f32[16,128], index: 1, kind: output, shape index: {}]  }
   0x1   :  { %8 = vsyncpa [#allocation3 + $0x1], 0 }
   0x2   :  { %9 = vsyncpa [#allocation4], 0 }
   0x3   :  { %11 = vsyncpa [#allocation4 + $0x1], 0  ;;  %s528_s6 = smov 0   ;;  %s530_s7 = smov 0  }
   0x4   :  { %s532_s8 = smov 0   ;;  %s534_s9 = smov 0  }
   0x5 LB: > { %s549_s10 = sadd.s32 4294967295, %s483_s9   ;;  %s298_s11 = sadd.s32 4294967294, %s483_s9   ;;  %s483_s9 = sphi %s534_s9, %s858_s9   ;;  %s479_s8 = sphi %s532_s8, %s857_s8   ;;  %s475_s7 = sphi %s530_s7, %s856_s7   ;;  %s471_s6 = sphi %s528_s6, %s855_s6  }
   0x6   : > { %s553_s12 = sadd.s32 1, %s483_s9   ;;  %s24_s13 = sadd.s32 1, %s479_s8 }
   0x7   : > { %s21_s14 = ssub.s32 %s483_s9, %s553_s12  ;;  %p31_p0 = scmp.ne.s32.totalorder %s479_s8, %s475_s7 }
   0x8   : > { %p22_p1 = scmp.eq.s32.totalorder %s21_s14, 0  ;;  %p32_p2 = scmp.eq.s32.totalorder %s483_s9, 0 }
   0x9   : > { %p37_p3 = scmp.ne.s32.totalorder %s475_s7, %s471_s6  ;;  %p38_p4 = scmp.eq.s32.totalorder %s549_s10, 0 }
   0xa   : > { %s565_s15 = scalar_select %p22_p1, %s479_s8, %s24_s13  }
   0xb   : > { %p567_p5 = por %p32_p2, %p31_p0  ;;  %p571_p6 = por %p38_p4, %p37_p3 }
   0xc   : > { %p61_p7 = scmp.eq.s32.totalorder %s549_s10, 1  ;;  %p67_p8 = scmp.eq.s32.totalorder %s298_s11, 1 }
   0xd   : > { %s835_s17 = scalar_select %p571_p6, 1, 0 }
   0xe   : > { %p326_p10 = scmp.lt.s32.totalorder %s483_s9, 2  ;;  %p578_p11 = por %p61_p7, %p31_p0 }
   0xf   : > { %p582_p12 = por %p67_p8, %p37_p3  ;;  %s87_s20 = sand.u32 1, %s479_s8  }
  0x10   : > { %s836_s18 = scalar_select %p578_p11, 1, 0 }
  0x11   : > { %s837_s19 = scalar_select %p582_p12, 1, 0 }
  0x12   : > { %s302_s21 = sshll.u32 %s483_s9, 7  ;;  %s301_s22 = sshll.u32 %s87_s20, 3 }
  0x13   : > { %s591_s25 = scalar_lea.hbm %s830_s0, %s302_s21  ;;  %s91_s26 = scalar_lea.vmem [#allocation2], %s301_s22 }
  0x14   : > { %s98_s27 = sshll.u32 %s91_s26, 4  ;;  %p595_p13 = pnand %p326_p10, %p567_p5  ;;  %s599_s27 = int_to_ptr.vmem [resolvable:$true] %s98_s27 }
  0x15   : > { %s88_s29 = scalar_lea.sflag [#allocation3], %s87_s20  ;;  %s391_s30 = scalar_lea.hbm %s591_s25, 128 }
  0x16   : > { %p392_p2 = scmp.ne.s32.totalorder %s591_s25, %s391_s30  ;;  %p393_p3 = pneg %p595_p13 }
  0x17   : > { %s396_s4 = scalar_lea.hbm %s830_s0, 256  ;;  %p397_p5 = scmp.lt.s32.totalorder %s591_s25, %s830_s0 }
  0x18   : > { %p394_p4 = pnand %p393_p3, %p392_p2  ;;  %p398_p8 = scmp.lt.s32.totalorder %s396_s4, %s391_s30 }
  0x1a   : > { %p395_p7 = pneg %p394_p4  ;;  %p399_p10 = por %p398_p8, %p397_p5 }
  0x1c   : > { %p400_p9 = pnand %p399_p10, %p395_p7 }
  0x1e   : > { %403 = shalt.err (!%p400_p9)
}
  0x1f   : > { %s404_s13 = scalar_lea.vmem %s599_s27, 128  ;;  %s485_s14 = smov [#allocation2]  }
  0x20   : > { %p405_p0 = scmp.ne.s32.totalorder %s599_s27, %s404_s13  ;;  %s409_s16 = sshll.u32 %s485_s14, 4  ;;  %s410_s16 = int_to_ptr.vmem [resolvable:$false] %s409_s16 }
  0x21   : > { %s411_s20 = scalar_lea.vmem %s410_s16, 256  ;;  %p412_p4 = scmp.lt.s32.totalorder %s599_s27, %s410_s16 }
  0x22   : > { %p407_p1 = pnand %p405_p0, %p393_p3  ;;  %p413_p12 = scmp.lt.s32.totalorder %s411_s20, %s404_s13 }
  0x24   : > { %p408_p2 = pneg %p407_p1  ;;  %p414_p11 = por %p413_p12, %p412_p4 }
  0x26   : > { %p415_p6 = pnand %p414_p11, %p408_p2 }
  0x28   : > { %418 = shalt.err (!%p415_p6)
}
  0x29   : > { %321 = dma.hbm_to_vmem [thread:$0]  (!%p595_p13), %s591_s25, 128, %s599_s27, %s88_s29  }
  0x2a   : > { %p839_p9 = scmp.lt.s32.totalorder %s483_s9, 3  ;;  %p840_p7 = scmp.ge.s32.totalorder %s483_s9, 1 }
  0x2c   : > { %p104_p0 = pnand %p840_p7, %p839_p9 }
  0x2d   : > { %s626_s21 = sand.u32 (!%p104_p0), 1, %s475_s7   ;;  %p841_p6 = scmp.ne.s32.totalorder (!%p104_p0), %s835_s17, 0 }
  0x2e   : > { %107 = sbr.rel (%p104_p0) target bundleno = 106 (0x6a), region = 24  ;;  %s304_s22 = sshll.u32 (!%p104_p0), %s626_s21, 3 }
  0x2f   : > { %s110_s23 = scalar_lea.sflag (!%p104_p0), [#allocation3], %s626_s21  ;;  %s113_s24 = scalar_lea.vmem (!%p104_p0), [#allocation2], %s304_s22 }
  0x33   : > { %462 = dma.done.wait (%p841_p6), %s110_s23, 128  }
  0x34   : > { %464 = vsyncadd (%p841_p6), %s110_s23, 4294967168  ;;  %v636_v0 = vld [vmem:[%s113_s24] sm:$0xff]  ;;  %v486_v13 = vmov 109.721756   ;;  %v487_v16 = vmov 125.679016  }
  0x35   : > { %v306_v1 = vclamps-f32 %v636_v0, 1.0  ;;  %v488_v18 = vmov 124.05888   ;;  %v489_v20 = vmov 143.88449   ;;  %v502_v55 = vmov 127.5  }
  0x36   : > { %v490_v23 = vmov 138.37416   ;;  %v491_v25 = vmov 141.8612   ;;  %v492_v29 = vmov 137.24112  }
  0x37   : > { %v307_v2 = vadd.f32 1.0, %v306_v1  ;;  %v493_v31 = vmov 127.12548   ;;  %v494_v36 = vmov 122.107056   ;;  %s131_s17 = scalar_lea.vmem [#allocation5], %s304_s22 }
  0x38   : > { %v495_v38 = vmov 126.80353   ;;  %v496_v41 = vmov 109.01123   ;;  %v497_v43 = vmov 121.33208  }
  0x39   : > { %v136_v3 = vmul.f32 16.0, %v307_v2  ;;  %v498_v45 = vmov 118.74231   ;;  %v499_v47 = vmov 123.89636   ;;  %s228_s25 = sshll.u32 %s131_s17, 4  ;;  %s790_s25 = int_to_ptr.vmem [resolvable:$true] %s228_s25 }
  0x3a   : > { %v500_v49 = vmov 139.28589   ;;  %v501_v51 = vmov 145.27832   ;;  %v503_v57 = vmov 129.3208  }
  0x3b   : > { %v137_v4 = vmin.f32 %v136_v3, 31.0  ;;  %v504_v62 = vmov 129.12016   ;;  %s309_s26 = sshll.u32 %s549_s10, 7  ;;  %s215_s30 = scalar_lea.sflag [#allocation4], %s626_s21 }
  0x3c   : > { %s226_s29 = scalar_lea.hbm %s831_s1, %s309_s26  ;;  %s419_s2 = scalar_lea.vmem %s790_s25, 128 }
  0x3d   : > { %v312_v5 = vtrunc.f32 %v137_v4  ;;  %p420_p11 = scmp.ne.s32.totalorder %s790_s25, %s419_s2  ;;  %p852_p12 = scmp.ne.s32.totalorder %s836_s18, 0 }
  0x3e   : > { %s517_s10 = smov [#allocation5]  }
  0x3f   : > { %v313_v6 = vcvt.f32.s32 %v312_v5  ;;  %v505_v5 = vmov 111.11548   ;;  %p421_p13 = pnand %p420_p11, %p852_p12  ;;  %s423_s3 = sshll.u32 %s517_s10, 4  ;;  %s424_s3 = int_to_ptr.vmem [resolvable:$false] %s423_s3 }
  0x40   : > { %s425_s4 = scalar_lea.vmem %s424_s3, 256  ;;  %p426_p3 = scmp.lt.s32.totalorder %s790_s25, %s424_s3 }
  0x41   : > { %v139_v7 = vand.u32 1, %v313_v6  ;;  %v141_v8 = vand.u32 2, %v313_v6  ;;  %v143_v10 = vand.u32 4, %v313_v6  ;;  %v145_v12 = vand.u32 8, %v313_v6  ;;  %p422_p1 = pneg %p421_p13  ;;  %p427_p5 = scmp.lt.s32.totalorder %s425_s4, %s419_s2 }
  0x42   : > { %v147_v22 = vand.u32 16, %v313_v6 }
  0x43   : > { %vm641_vm0 = vcmp.gt.s32.totalorder %v139_v7, 0  ;;  %vm645_vm1 = vcmp.gt.s32.totalorder %v141_v8, 0  ;;  %vm663_vm2 = vcmp.gt.s32.totalorder %v143_v10, 0  ;;  %vm673_vm3 = vcmp.gt.s32.totalorder %v145_v12, 0  ;;  %p428_p8 = por %p427_p5, %p426_p3 }
  0x44   : > { %v149_v14 = vsel %vm641_vm0, 115.714096, %v486_v13  ;;  %v150_v15 = vsel %vm641_vm0, 115.33958, %v486_v13  ;;  %v151_v17 = vsel %vm641_vm0, 136.25772, %v487_v16 }
  0x45   : > { %v152_v19 = vsel %vm641_vm0, 132.65408, %v488_v18  ;;  %v155_v21 = vsel %vm641_vm0, 145.98877, %v489_v20  ;;  %v156_v24 = vsel %vm641_vm0, 139.82085, %v490_v23  ;;  %v153_v28 = vsel %vm645_vm1, %v151_v17, %v149_v14  ;;  %p429_p10 = pnand %p428_p8, %p422_p1 }
  0x46   : > { %v157_v26 = vsel %vm641_vm0, 132.89294, %v491_v25  ;;  %v158_v30 = vsel %vm641_vm0, 132.19647, %v492_v29  ;;  %v172_v32 = vsel %vm641_vm0, 127.5, %v493_v31  ;;  %v154_v34 = vsel %vm645_vm1, %v152_v19, %v150_v15 }
  0x47   : > { %v159_v35 = vsel %vm645_vm1, %v157_v26, %v155_v21  ;;  %v163_v37 = vsel %vm641_vm0, 113.138794, %v494_v36  ;;  %v164_v39 = vsel %vm641_vm0, 122.87991, %v495_v38  ;;  %v160_v40 = vsel %vm645_vm1, %v158_v30, %v156_v24 }
  0x48   : > { %v165_v42 = vsel %vm641_vm0, 111.11548, %v496_v41  ;;  %v166_v44 = vsel %vm641_vm0, 121.989655, %v497_v43  ;;  %v169_v46 = vsel %vm641_vm0, 129.32104, %v498_v45  ;;  %v161_v54 = vsel %vm663_vm2, %v159_v35, %v153_v28 }
  0x49   : > { %v170_v48 = vsel %vm641_vm0, 125.879875, %v499_v47  ;;  %v171_v50 = vsel %vm641_vm0, 145.2782, %v500_v49  ;;  %v179_v52 = vsel %vm641_vm0, 139.28589, %v501_v51  ;;  %v162_v59 = vsel %vm663_vm2, %v160_v40, %v154_v34 }
  0x4a   : > { %vm699_vm4 = vcmp.gt.s32.totalorder %v147_v22, 0  ;;  %v180_v56 = vsel %vm641_vm0, 127.87453, %v502_v55  ;;  %v181_v58 = vsel %vm641_vm0, 118.74243, %v503_v57  ;;  %v167_v60 = vsel %vm645_vm1, %v165_v42, %v163_v37 }
  0x4b   : > { %v168_v61 = vsel %vm645_vm1, %v166_v44, %v164_v39  ;;  %v182_v63 = vsel %vm641_vm0, 131.1036, %v504_v62  ;;  %v173_v2 = vsel %vm645_vm1, %v171_v50, %v169_v46  ;;  %v174_v3 = vsel %vm645_vm1, %v172_v32, %v170_v48 }
  0x4c   : > { %v183_v4 = vsel %vm645_vm1, %v181_v58, %v179_v52  ;;  %v185_v6 = vsel %vm641_vm0, 109.01123, %v505_v5  ;;  %v184_v7 = vsel %vm645_vm1, %v182_v63, %v180_v56  ;;  %v506_v8 = vmov 133.01035  }
  0x4d   : > { %v186_v10 = vsel %vm641_vm0, 133.66792, %v506_v8  ;;  %v507_v12 = vmov 113.138916   ;;  %v508_v14 = vmov 132.12004   ;;  %v175_v22 = vsel %vm663_vm2, %v173_v2, %v167_v60 }
  0x4e   : > { %v187_v13 = vsel %vm641_vm0, 122.10693, %v507_v12  ;;  %v188_v15 = vsel %vm641_vm0, 128.19653, %v508_v14  ;;  %v509_v18 = vmov 132.89307   ;;  %v176_v23 = vsel %vm663_vm2, %v174_v3, %v168_v61 }
  0x4f   : > { %v189_v16 = vsel %vm645_vm1, %v187_v13, %v185_v6  ;;  %v190_v17 = vsel %vm645_vm1, %v188_v15, %v186_v10  ;;  %v193_v19 = vsel %vm641_vm0, 141.86108, %v509_v18  ;;  %v510_v20 = vmov 122.80347  }
  0x50   : > { %v194_v21 = vsel %vm641_vm0, 117.75896, %v510_v20  ;;  %v511_v24 = vmov 145.98877   ;;  %v512_v26 = vmov 115.17915   ;;  %v191_v36 = vsel %vm663_vm2, %v189_v16, %v183_v4 }
  0x51   : > { %v195_v25 = vsel %vm641_vm0, 143.88452, %v511_v24  ;;  %v196_v28 = vsel %vm641_vm0, 116.625824, %v512_v26  ;;  %v513_v31 = vmov 136.25757   ;;  %v192_v37 = vsel %vm663_vm2, %v190_v17, %v184_v7 }
  0x52   : > { %v197_v29 = vsel %vm645_vm1, %v195_v25, %v193_v19  ;;  %v198_v30 = vsel %vm645_vm1, %v196_v28, %v194_v21  ;;  %v199_v32 = vsel %vm641_vm0, 125.6792, %v513_v31  ;;  %v514_v34 = vmov 122.34604  }
  0x53   : > { %v200_v35 = vsel %vm641_vm0, 130.94096, %v514_v34  ;;  %v515_v38 = vmov 115.71411   ;;  %v516_v40 = vmov 139.66042   ;;  %v177_v42 = vsel %vm673_vm3, %v175_v22, %v161_v54 }
  0x54   : > { %v201_v39 = vsel %vm641_vm0, 109.72168, %v515_v38  ;;  %v202_v41 = vsel %vm641_vm0, 145.27832, %v516_v40  ;;  %v178_v43 = vsel %vm673_vm3, %v176_v23, %v162_v59 }
  0x55   : > { %v203_v44 = vsel %vm645_vm1, %v201_v39, %v199_v32  ;;  %v204_v45 = vsel %vm645_vm1, %v202_v41, %v200_v35 }
  0x56   : > { %v205_v46 = vsel %vm663_vm2, %v203_v44, %v197_v29  ;;  %v206_v9 = vsel %vm663_vm2, %v204_v45, %v198_v30 }
  0x57   : > { %v207_v47 = vsel %vm673_vm3, %v205_v46, %v191_v36  ;;  %v208_v48 = vsel %vm673_vm3, %v206_v9, %v192_v37 }
  0x58   : > { %v209_v11 = vsel %vm699_vm4, %v207_v47, %v177_v42  ;;  %v210_v49 = vsel %vm699_vm4, %v208_v48, %v178_v43 }
  0x59   : > { %v211_v27 = vmul.f32 %v306_v1, %v209_v11 }
  0x5b   : > { %v212_v33 = vadd.f32 %v211_v27, %v210_v49 }
  0x5d   : > { %213 = vst [vmem:[%s131_s17] sm:$0xff] %v212_v33 }
  0x5e   : > { %432 = shalt.err (!%p429_p10)
}
  0x5f   : > { %s433_s5 = scalar_lea.hbm %s226_s29, 128  ;;  %s437_s14 = scalar_lea.hbm %s831_s1, 256 }
  0x60   : > { %p434_p2 = scmp.ne.s32.totalorder %s226_s29, %s433_s5  ;;  %p438_p7 = scmp.lt.s32.totalorder %s226_s29, %s831_s1 }
  0x61   : > { %p439_p0 = scmp.lt.s32.totalorder %s437_s14, %s433_s5 }
  0x62   : > { %p435_p4 = pnand %p434_p2, %p852_p12 }
  0x63   : > { %p440_p6 = por %p439_p0, %p438_p7 }
  0x64   : > { %p436_p9 = pneg %p435_p4 }
  0x66   : > { %p441_p11 = pnand %p440_p6, %p436_p9 }
  0x68   : > { %444 = shalt.err (!%p441_p11)
}
  0x69   : > { %316 = dma.vmem_to_hbm [thread:$0]  (%p852_p12), %s790_s25, 128, %s226_s29, %s215_s30  }
  0x6a PF: > { %s240_s21 = sand.u32 1, %s471_s6   ;;  %p853_p13 = scmp.ne.s32.totalorder %s837_s19, 0 }
  0x6b   : > { %p854_p1 = scmp.ge.s32.totalorder %s483_s9, 2  ;;  %s241_s22 = scalar_lea.sflag [#allocation4], %s240_s21 }
  0x6d   : > { %p323_p3 = pnand %p854_p1, %p853_p13 }
  0x6f   : > { %p324_p5 = pneg %p323_p3 }
  0x71   : > { %466 = dma.done.wait (%p324_p5), %s241_s22, 128  }
  0x72   : > { %468 = vsyncadd (%p324_p5), %s241_s22, 4294967168  ;;  %p14_p8 = scmp.ge.s32.totalorder %s553_s12, 4   ;;  %s855_s6 = smov %s475_s7 }
  0x73   : > { %s856_s7 = smov %s479_s8  ;;  %s857_s8 = smov %s565_s15 }
  0x74   : > { %s858_s9 = smov %s553_s12  ;;  %16 = sbr.rel (!%p14_p8) target bundleno = 5 (0x5), region = 69 }
  0x79   :  { %246 = vsyncpa [#allocation3], 1 }
  0x7a   :  { %248 = vsyncpa [#allocation3 + $0x1], 1 }
  0x7b   :  { %249 = vsyncpa [#allocation4], 1 }
  0x7c   :  { %251 = vsyncpa [#allocation4 + $0x1], 1 }

</bundles_post_ra>
